<compile_context>
chip_gen: v7x
topology: tpu7x:2x2x1
jax: 0.10.0
libtpu: 0.0.40
codegen_flags: <defaults>
</compile_context>

<pallas_src>
import functools

import jax
import jax.numpy as jnp
from jax.experimental import pallas as pl
from jax.experimental.pallas import tpu as pltpu


def _attn_weights_kernel(qk_ref, w_ref, b_ref, temp_ref,
                         aw_ref, ab_ref, gram_ref, *, c_out, hw, tile):
    """Pass 1: accumulate Gram(qk) over HW tiles; on the last tile compute
    attn = softmax(norm(q) @ norm(k)^T * temp) and emit aw = attn@W, ab = attn@b."""
    t = pl.program_id(1)

    @pl.when(t == 0)
    def _():
        gram_ref[...] = jnp.zeros_like(gram_ref)

    qk = qk_ref[0]                                        # (2C, tile)
    if hw % tile != 0:
        # Ragged tail: zero the out-of-range lanes so they add nothing to the
        # Gram (full tiles: rem >= tile, mask is all-true; cheap VPU select).
        rem = hw - t * tile
        lane = jax.lax.broadcasted_iota(jnp.int32, qk.shape, 1)
        qk = jnp.where(lane < rem, qk, jnp.zeros_like(qk))

    # Contract over the pixel (lane) axis of both operands -> no HW-wide transpose.
    gram_ref[...] += jax.lax.dot_general(
        qk, qk, (((1,), (1,)), ((), ())),
        preferred_element_type=jnp.float32)

    @pl.when(t == pl.num_programs(1) - 1)
    def _():
        C = c_out
        gram = gram_ref[...]                              # (2C, 2C) fp32
        s = gram[C:, :C]                                  # s[i,j] = q_i . k_j
        gram_kk = gram[:C, :C]
        gram_qq = gram[C:, C:]
        row = jax.lax.broadcasted_iota(jnp.int32, (C, C), 0)
        col = jax.lax.broadcasted_iota(jnp.int32, (C, C), 1)
        eye = row == col
        sq = jnp.sum(jnp.where(eye, gram_qq, 0.0), axis=1, keepdims=True)  # (C,1) ||q_i||^2
        sk = jnp.sum(jnp.where(eye, gram_kk, 0.0), axis=0, keepdims=True)  # (1,C) ||k_j||^2
        # F.normalize(dim=-1): x / max(||x||, 1e-12) == x * rsqrt(max(||x||^2, 1e-24))
        inv_q = jax.lax.rsqrt(jnp.maximum(sq, 1e-24))
        inv_k = jax.lax.rsqrt(jnp.maximum(sk, 1e-24))
        logits = s * inv_q * inv_k * temp_ref[0]
        logits = logits - jnp.max(logits, axis=-1, keepdims=True)
        e = jnp.exp(logits)
        attn = e * pl.reciprocal(jnp.sum(e, axis=-1, keepdims=True), approx=True)
        # Reassociation: attn @ (W x + b) == (attn @ W) @ x + (attn @ b)
        aw_ref[0] = jnp.dot(attn, w_ref[...],
                            preferred_element_type=jnp.float32).astype(aw_ref.dtype)
        ab_ref[0] = jnp.dot(attn, b_ref[...],
                            preferred_element_type=jnp.float32).astype(ab_ref.dtype)


def _apply_kernel(aw_ref, ab_ref, x_ref, out_ref):
    """Pass 2: stream x tiles; out_tile = (attn @ W) @ x_tile + attn @ b.
    Each output column depends only on the matching x column, so out-of-range
    lanes of a ragged last tile are safely dropped by the masked store."""
    out = jnp.dot(aw_ref[0], x_ref[0],
                  preferred_element_type=jnp.float32) + ab_ref[0]
    out_ref[0, 0] = out.astype(out_ref.dtype)


def sub_attention(x_nchw, qk_nchw, w, b, temperature, *, out_channels, tile_hw=1024):
    """x_nchw: (B, C_in, H, W), qk_nchw: (B, 2*out_channels, H, W)."""
    B, C_in, H, W = x_nchw.shape
    C = out_channels
    HW = H * W
    assert qk_nchw.shape == (B, 2 * C, H, W)

    dtype = x_nchw.dtype

    # Lane-dense tiling: tile is a multiple of 128; no host-side padding.
    tile = min(int(tile_hw), pl.cdiv(HW, 128) * 128)
    tile = max(128, pl.cdiv(tile, 128) * 128)
    n_tiles = pl.cdiv(HW, tile)

    x = x_nchw.reshape(B, C_in, HW)
    qk = qk_nchw.reshape(B, 2 * C, HW).astype(dtype)
    w2d = w.reshape(C, C_in).astype(dtype)    # conv weight (C,Cin,1,1) -> (C,Cin)
    b2d = b.reshape(C, 1).astype(dtype)
    temp = temperature.reshape(1).astype(jnp.float32)

    # ---- Pass 1: attention weights folded into the 1x1-conv weights --------
    aw, ab = pl.pallas_call(
        functools.partial(_attn_weights_kernel, c_out=C, hw=HW, tile=tile),
        out_shape=(jax.ShapeDtypeStruct((B, C, C_in), dtype),
                   jax.ShapeDtypeStruct((B, C, 1), dtype)),
        grid_spec=pltpu.PrefetchScalarGridSpec(
            num_scalar_prefetch=0,
            grid=(B, n_tiles),
            in_specs=[
                pl.BlockSpec((1, 2 * C, tile), lambda bi, ti: (bi, 0, ti)),
                pl.BlockSpec((C, C_in), lambda bi, ti: (0, 0)),
                pl.BlockSpec((C, 1), lambda bi, ti: (0, 0)),
                pl.BlockSpec(memory_space=pltpu.SMEM),
            ],
            out_specs=[
                pl.BlockSpec((1, C, C_in), lambda bi, ti: (bi, 0, 0)),
                pl.BlockSpec((1, C, 1), lambda bi, ti: (bi, 0, 0)),
            ],
            scratch_shapes=[pltpu.VMEM((2 * C, 2 * C), jnp.float32)],
        ),
        compiler_params=pltpu.CompilerParams(
            dimension_semantics=("parallel", "arbitrary")),
    )(qk, w2d, b2d, temp)

    # ---- Pass 2: stream x; fully parallel over batch and pixel tiles -------
    out = pl.pallas_call(
        _apply_kernel,
        out_shape=jax.ShapeDtypeStruct((B, 1, C, HW), dtype),
        grid_spec=pltpu.PrefetchScalarGridSpec(
            num_scalar_prefetch=0,
            grid=(B, n_tiles),
            in_specs=[
                pl.BlockSpec((1, C, C_in), lambda bi, ti: (bi, 0, 0)),
                pl.BlockSpec((1, C, 1), lambda bi, ti: (bi, 0, 0)),
                pl.BlockSpec((1, C_in, tile), lambda bi, ti: (bi, 0, ti)),
            ],
            out_specs=pl.BlockSpec((1, 1, C, tile), lambda bi, ti: (bi, 0, 0, ti)),
        ),
        compiler_params=pltpu.CompilerParams(
            dimension_semantics=("parallel", "parallel")),
    )(aw, ab, x)

    return out   # (B, 1, C, H*W)


def sub_attention_ref(x_nchw, qk_nchw, w, b, temperature, *, out_channels):
    """Pure-JAX reference mirroring the PyTorch forward."""
    B, C_in, H, W = x_nchw.shape
    C = out_channels
    HW = H * W
    w2d = w.reshape(C, C_in)
    v = jnp.einsum("oc,bchw->bohw", w2d, x_nchw) + b.reshape(1, C, 1, 1)
    q = qk_nchw[:, C:, :, :].reshape(B, 1, C, HW)
    k = qk_nchw[:, :C, :, :].reshape(B, 1, C, HW)
    v = v.reshape(B, 1, C, HW)

    def l2norm(t):
        n = jnp.sqrt(jnp.sum(t * t, axis=-1, keepdims=True))
        return t / jnp.maximum(n, 1e-12)

    q = l2norm(q)
    k = l2norm(k)
    attn = jnp.einsum("bhcd,bhed->bhce", q, k) * temperature.reshape(())
    attn = jax.nn.softmax(attn, axis=-1)
    return jnp.einsum("bhce,bhed->bhcd", attn, v)


def _check(B, C_in, C_out, H, W, tile_hw, key):
    kx, kqk, kw, kb = jax.random.split(key, 4)
    x = jax.random.normal(kx, (B, C_in, H, W), dtype=jnp.float32)
    qk = jax.random.normal(kqk, (B, 2 * C_out, H, W), dtype=jnp.float32)
    w = jax.random.normal(kw, (C_out, C_in, 1, 1), dtype=jnp.float32) * 0.1
    b = jax.random.normal(kb, (C_out,), dtype=jnp.float32) * 0.1
    temperature = jnp.ones((1, 1, 1), dtype=jnp.float32)

    out = sub_attention(x, qk, w, b, temperature, out_channels=C_out, tile_hw=tile_hw)
    out = jax.block_until_ready(out)
    ref = sub_attention_ref(x, qk, w, b, temperature, out_channels=C_out)
    assert out.shape == (B, 1, C_out, H * W)
    assert jnp.allclose(out, ref, atol=2e-3, rtol=2e-3), "mismatch vs reference"


if __name__ == "__main__":
    key = jax.random.PRNGKey(0)
    k1, k2 = jax.random.split(key)
    # Multi-tile Gram accumulation path (HW = 256, tile = 128 -> 2 full tiles).
    _check(B=2, C_in=16, C_out=8, H=16, W=16, tile_hw=128, key=k1)
    # Ragged pixel-axis path (HW = 156, tile = 128 -> 1 full + 1 partial tile),
    # exercising the in-kernel tail masking / masked output stores (no padding).
    _check(B=2, C_in=16, C_out=8, H=12, W=13, tile_hw=128, key=k2)

    print("KERNEL_OK")
</pallas_src>

<mosaic_0001>
module attributes {stable_mosaic.version = 11 : i64} {
  func.func @_attn_weights_kernel(%arg0: i32, %arg1: i32, %arg2: memref<1x16x128xf32, #tpu.memory_space<vmem>>, %arg3: memref<8x16xf32, #tpu.memory_space<vmem>>, %arg4: memref<8x1xf32, #tpu.memory_space<vmem>>, %arg5: memref<1xf32, #tpu.memory_space<smem>>, %arg6: memref<1x8x16xf32, #tpu.memory_space<vmem>>, %arg7: memref<1x8x1xf32, #tpu.memory_space<vmem>>, %arg8: memref<16x16xf32, #tpu.memory_space<vmem>>) attributes {dimension_semantics = [#tpu.dimension_semantics<parallel>, #tpu.dimension_semantics<arbitrary>], iteration_bounds = array<i64: 2, 2>, scalar_prefetch = 0 : i64, scratch_operands = 1 : i64, tpu.core_type = #tpu.core_type<tc>, window_params = [{transform_indices = @transform_0, window_bounds = array<i64: 1, 16, 128>}, {pipeline_mode = #tpu.pipeline_mode<synchronous>, transform_indices = @transform_1, window_bounds = array<i64: 8, 16>}, {pipeline_mode = #tpu.pipeline_mode<synchronous>, transform_indices = @transform_2, window_bounds = array<i64: 8, 1>}, {transform_indices = @transform_3, window_bounds = array<i64: 1>}, {transform_indices = @transform_4, window_bounds = array<i64: 1, 8, 16>}, {transform_indices = @transform_5, window_bounds = array<i64: 1, 8, 1>}]} {
    %c0_i32 = arith.constant 0 : i32
    %0 = arith.cmpi eq, %arg1, %c0_i32 : i32
    %1 = arith.extui %0 : i1 to i32
    %c0_i32_0 = arith.constant 0 : i32
    %2 = arith.cmpi ne, %1, %c0_i32_0 : i32
    scf.if %2 {
      %cst_8 = arith.constant 0.000000e+00 : f32
      %12 = vector.broadcast %cst_8 : f32 to vector<16x16xf32>
      %c0_9 = arith.constant 0 : index
      %c0_10 = arith.constant 0 : index
      %13 = vector.load %arg8[%c0_9, %c0_10] : memref<16x16xf32, #tpu.memory_space<vmem>>, vector<16x16xf32>
      tpu.vector_store %arg8[%c0_9, %c0_10], %12 {strides = array<i32>} : memref<16x16xf32, #tpu.memory_space<vmem>>, vector<16x16xf32>,
    } else {
    }
    %c0 = arith.constant 0 : index
    %c0_1 = arith.constant 0 : index
    %c0_2 = arith.constant 0 : index
    %3 = vector.load %arg2[%c0, %c0_1, %c0_2] : memref<1x16x128xf32, #tpu.memory_space<vmem>>, vector<1x16x128xf32>
    %4 = vector.shape_cast %3 : vector<1x16x128xf32> to vector<16x128xf32>
    %c0_3 = arith.constant 0 : index
    %c0_4 = arith.constant 0 : index
    %5 = vector.load %arg8[%c0_3, %c0_4] : memref<16x16xf32, #tpu.memory_space<vmem>>, vector<16x16xf32>
    %cst = arith.constant dense<0.000000e+00> : vector<16x16xf32>
    %6 = tpu.matmul %4, %4, %cst {dimension_numbers = #tpu.dot_dimension_numbers<[1], [1], [0], [0], [0, 0, 1, 0], [], []>} : vector<16x128xf32>, vector<16x128xf32>, vector<16x16xf32> -> vector<16x16xf32>
    %7 = arith.addf %5, %6 : vector<16x16xf32>
    %c0_5 = arith.constant 0 : index
    %c0_6 = arith.constant 0 : index
    %8 = vector.load %arg8[%c0_5, %c0_6] : memref<16x16xf32, #tpu.memory_space<vmem>>, vector<16x16xf32>
    tpu.vector_store %arg8[%c0_5, %c0_6], %7 {strides = array<i32>} : memref<16x16xf32, #tpu.memory_space<vmem>>, vector<16x16xf32>,
    %c1_i32 = arith.constant 1 : i32
    %9 = arith.cmpi eq, %arg1, %c1_i32 : i32
    %10 = arith.extui %9 : i1 to i32
    %c0_i32_7 = arith.constant 0 : i32
    %11 = arith.cmpi ne, %10, %c0_i32_7 : i32
    scf.if %11 {
      %c0_8 = arith.constant 0 : index
      %c0_9 = arith.constant 0 : index
      %12 = vector.load %arg8[%c0_8, %c0_9] : memref<16x16xf32, #tpu.memory_space<vmem>>, vector<16x16xf32>
      %13 = vector.extract_strided_slice %12 {offsets = [8, 0], sizes = [8, 8], strides = [1, 1]} : vector<16x16xf32> to vector<8x8xf32>
      %14 = vector.extract_strided_slice %12 {offsets = [0, 0], sizes = [8, 8], strides = [1, 1]} : vector<16x16xf32> to vector<8x8xf32>
      %15 = vector.extract_strided_slice %12 {offsets = [8, 8], sizes = [8, 8], strides = [1, 1]} : vector<16x16xf32> to vector<8x8xf32>
      %16 = tpu.iota {dimensions = array<i32: 0>} : vector<8x8xi32>
      %17 = tpu.iota {dimensions = array<i32: 1>} : vector<8x8xi32>
      %18 = arith.cmpi eq, %16, %17 : vector<8x8xi32>
      %cst_10 = arith.constant 0.000000e+00 : f32
      %19 = vector.broadcast %cst_10 : f32 to vector<8x8xf32>
      %20 = arith.select %18, %15, %19 : vector<8x8xi1>, vector<8x8xf32>
      %cst_11 = arith.constant dense<0.000000e+00> : vector<8xf32>
      %21 = vector.multi_reduction <add>, %20, %cst_11 [1] : vector<8x8xf32> to vector<8xf32>
      %22 = vector.shape_cast %21 : vector<8xf32> to vector<8x1xf32>
      %cst_12 = arith.constant 0.000000e+00 : f32
      %23 = vector.broadcast %cst_12 : f32 to vector<8x8xf32>
      %24 = arith.select %18, %14, %23 : vector<8x8xi1>, vector<8x8xf32>
      %cst_13 = arith.constant dense<0.000000e+00> : vector<8xf32>
      %25 = vector.multi_reduction <add>, %24, %cst_13 [0] : vector<8x8xf32> to vector<8xf32>
      %26 = vector.shape_cast %25 : vector<8xf32> to vector<1x8xf32>
      %cst_14 = arith.constant 1.000000e-24 : f32
      %27 = vector.broadcast %cst_14 : f32 to vector<8x1xf32>
      %28 = arith.maximumf %22, %27 : vector<8x1xf32>
      %29 = math.rsqrt %28 : vector<8x1xf32>
      %cst_15 = arith.constant 1.000000e-24 : f32
      %30 = vector.broadcast %cst_15 : f32 to vector<1x8xf32>
      %31 = arith.maximumf %26, %30 : vector<1x8xf32>
      %32 = math.rsqrt %31 : vector<1x8xf32>
      %33 = vector.broadcast %29 : vector<8x1xf32> to vector<8x8xf32>
      %34 = arith.mulf %13, %33 : vector<8x8xf32>
      %35 = vector.broadcast %32 : vector<1x8xf32> to vector<8x8xf32>
      %36 = arith.mulf %34, %35 : vector<8x8xf32>
      %c0_16 = arith.constant 0 : index
      %37 = memref.load %arg5[%c0_16] : memref<1xf32, #tpu.memory_space<smem>>
      %38 = vector.broadcast %37 : f32 to vector<8x8xf32>
      %39 = arith.mulf %36, %38 : vector<8x8xf32>
      %cst_17 = arith.constant dense<0xFF800000> : vector<8xf32>
      %40 = vector.multi_reduction <maximumf>, %39, %cst_17 [1] : vector<8x8xf32> to vector<8xf32>
      %41 = vector.shape_cast %40 : vector<8xf32> to vector<8x1xf32>
      %42 = vector.broadcast %41 : vector<8x1xf32> to vector<8x8xf32>
      %43 = arith.subf %39, %42 : vector<8x8xf32>
      %44 = math.exp %43 : vector<8x8xf32>
      %cst_18 = arith.constant dense<0.000000e+00> : vector<8xf32>
      %45 = vector.multi_reduction <add>, %44, %cst_18 [1] : vector<8x8xf32> to vector<8xf32>
      %46 = vector.shape_cast %45 : vector<8xf32> to vector<8x1xf32>
      %47 = tpu.reciprocal %46 {approx = true} : vector<8x1xf32> -> vector<8x1xf32>
      %48 = vector.broadcast %47 : vector<8x1xf32> to vector<8x8xf32>
      %49 = arith.mulf %44, %48 : vector<8x8xf32>
      %c0_19 = arith.constant 0 : index
      %c0_20 = arith.constant 0 : index
      %50 = vector.load %arg3[%c0_19, %c0_20] : memref<8x16xf32, #tpu.memory_space<vmem>>, vector<8x16xf32>
      %cst_21 = arith.constant dense<0.000000e+00> : vector<8x16xf32>
      %51 = tpu.matmul %49, %50, %cst_21 {dimension_numbers = #tpu.dot_dimension_numbers<[1], [0], [0], [1], [0, 0, 1, 1], [], []>} : vector<8x8xf32>, vector<8x16xf32>, vector<8x16xf32> -> vector<8x16xf32>
      %c0_22 = arith.constant 0 : index
      %c0_23 = arith.constant 0 : index
      %c0_24 = arith.constant 0 : index
      %52 = vector.load %arg6[%c0_22, %c0_23, %c0_24] : memref<1x8x16xf32, #tpu.memory_space<vmem>>, vector<1x8x16xf32>
      %53 = vector.shape_cast %52 : vector<1x8x16xf32> to vector<8x16xf32>
      %54 = vector.shape_cast %51 : vector<8x16xf32> to vector<1x8x16xf32>
      tpu.vector_store %arg6[%c0_22, %c0_23, %c0_24], %54 {strides = array<i32>} : memref<1x8x16xf32, #tpu.memory_space<vmem>>, vector<1x8x16xf32>,
      %c0_25 = arith.constant 0 : index
      %c0_26 = arith.constant 0 : index
      %55 = vector.load %arg4[%c0_25, %c0_26] : memref<8x1xf32, #tpu.memory_space<vmem>>, vector<8x1xf32>
      %cst_27 = arith.constant dense<0.000000e+00> : vector<8x1xf32>
      %56 = tpu.matmul %49, %55, %cst_27 {dimension_numbers = #tpu.dot_dimension_numbers<[1], [0], [0], [1], [0, 0, 1, 1], [], []>} : vector<8x8xf32>, vector<8x1xf32>, vector<8x1xf32> -> vector<8x1xf32>
      %c0_28 = arith.constant 0 : index
      %c0_29 = arith.constant 0 : index
      %c0_30 = arith.constant 0 : index
      %57 = vector.load %arg7[%c0_28, %c0_29, %c0_30] : memref<1x8x1xf32, #tpu.memory_space<vmem>>, vector<1x8x1xf32>
      %58 = vector.shape_cast %57 : vector<1x8x1xf32> to vector<8x1xf32>
      %59 = vector.shape_cast %56 : vector<8x1xf32> to vector<1x8x1xf32>
      tpu.vector_store %arg7[%c0_28, %c0_29, %c0_30], %59 {strides = array<i32>} : memref<1x8x1xf32, #tpu.memory_space<vmem>>, vector<1x8x1xf32>,
    } else {
    }
    return
  }
  func.func @transform_0(%arg0: i32, %arg1: i32) -> (i32, i32, i32) {
    %c0_i32 = arith.constant 0 : i32
    %c0_i32_0 = arith.constant 0 : i32
    return %arg0, %c0_i32, %arg1 : i32, i32, i32
  }
  func.func @transform_1(%arg0: i32, %arg1: i32) -> (i32, i32) {
    %c0_i32 = arith.constant 0 : i32
    %c0_i32_0 = arith.constant 0 : i32
    %c0_i32_1 = arith.constant 0 : i32
    return %c0_i32, %c0_i32_0 : i32, i32
  }
  func.func @transform_2(%arg0: i32, %arg1: i32) -> (i32, i32) {
    %c0_i32 = arith.constant 0 : i32
    %c0_i32_0 = arith.constant 0 : i32
    %c0_i32_1 = arith.constant 0 : i32
    return %c0_i32, %c0_i32_0 : i32, i32
  }
  func.func @transform_3(%arg0: i32, %arg1: i32) -> i32 {
    %c0_i32 = arith.constant 0 : i32
    %c0_i32_0 = arith.constant 0 : i32
    return %c0_i32 : i32
  }
  func.func @transform_4(%arg0: i32, %arg1: i32) -> (i32, i32, i32) {
    %c0_i32 = arith.constant 0 : i32
    %c0_i32_0 = arith.constant 0 : i32
    %c0_i32_1 = arith.constant 0 : i32
    return %arg0, %c0_i32, %c0_i32_0 : i32, i32, i32
  }
  func.func @transform_5(%arg0: i32, %arg1: i32) -> (i32, i32, i32) {
    %c0_i32 = arith.constant 0 : i32
    %c0_i32_0 = arith.constant 0 : i32
    %c0_i32_1 = arith.constant 0 : i32
    return %arg0, %c0_i32, %c0_i32_0 : i32, i32, i32
  }
}

</mosaic_0001>

<bundles_post_ra>
// kernel: tpu_custom_call.1
= control target key start
LH: loop header
LB: loop body
LE: loop exit
PB: predicated region body
PF: predicated region fallthrough
CT: control target
= control target key end

     0   :  { %s1293_s0 = inlined_call_operand.hbm [shape: f32[2,16,256], index: 0, kind: input, shape index: {}]   ;;  %s1294_s1 = inlined_call_operand.vmem [shape: f32[8,16], index: 1, kind: input, shape index: {}]   ;;  %s1295_s2 = inlined_call_operand.vmem [shape: f32[8,1], index: 2, kind: input, shape index: {}]   ;;  %s1296_s3 = inlined_call_operand.<no memory space> [shape: f32[1], index: 3, kind: input, shape index: {}]   ;;  %s1297_s4 = inlined_call_operand.hbm [shape: f32[2,8,16], index: 4, kind: output, shape index: {0}]   ;;  %s1298_s5 = inlined_call_operand.vmem [shape: f32[2,8,1], index: 5, kind: output, shape index: {1}]  }
   0x1   :  { %11 = sst [smem:[#allocation3]] %s1296_s3 }
   0x2   :  { %12 = vsyncpa [#allocation5], 0 }
   0x3   :  { %14 = vsyncpa [#allocation5 + $0x1], 0 }
   0x4   :  { %15 = vsyncpa [#allocation6], 0 }
   0x5   :  { %17 = vsyncpa [#allocation6 + $0x1], 0  ;;  %s1046_s20 = smov 0   ;;  %s1048_s21 = smov 0  }
   0x6   :  { %s1050_s22 = smov 0   ;;  %s1052_s23 = smov 0  }
   0x7   :  { %s1054_s24 = smov 0   ;;  %s1056_s25 = smov 0  }
   0x8   :  { %s1058_s26 = smov 0   ;;  %s1060_s27 = smov 0  }
   0x9   :  { %s1062_s3 = smov 0   ;;  %s1064_s28 = smov 0  }
   0xa   :  { %s1066_s29 = smov 0  }
   0xb LB: > { %s685_s30 = sadd.s32 4294967295, %s1002_s29   ;;  %s686_s6 = sadd.s32 4294967294, %s1002_s29   ;;  %s1002_s29 = sphi %s1066_s29, %s23_s29   ;;  %s998_s28 = sphi %s1064_s28, %s1324_s28   ;;  %s994_s3 = sphi %s1062_s3, %s1323_s3   ;;  %s990_s27 = sphi %s1060_s27, %s1322_s27   ;;  %s986_s26 = sphi %s1058_s26, %s1321_s26   ;;  %s982_s25 = sphi %s1056_s25, %s1320_s25   ;;  %s978_s24 = sphi %s1054_s24, %s1319_s24   ;;  %s974_s23 = sphi %s1052_s23, %s1318_s23   ;;  %s970_s22 = sphi %s1050_s22, %s1317_s22   ;;  %s966_s21 = sphi %s1048_s21, %s1316_s21   ;;  %s962_s20 = sphi %s1046_s20, %s1315_s20  }
   0xc   : > { %s32_s7 = sadd.s32 1, %s994_s3  ;;  %s35_s8 = sadd.s32 1, %s998_s28 }
   0xd   : > { %p33_p0 = scmp.ge.s32.totalorder %s32_s7, 2  ;;  %s44_s9 = sadd.s32 1, %s982_s25 }
   0xe   : > { %p51_p1 = scmp.ne.s32.totalorder %s982_s25, %s978_s24  ;;  %p52_p2 = scmp.eq.s32.totalorder %s1002_s29, 0 }
   0xf   : > { %s1326_s7 = smov (%p33_p0, %s32_s7), 0  ;;  %s1328_s8 = smov (!%p33_p0, %s35_s8), %s998_s28 }
  0x10   : > { %1302 = sst [smem:[#allocation10_spill]] %s1326_s7  ;;  %s40_s10 = ssub.s32 %s994_s3, %s1326_s7 }
  0x11   : > { %p1112_p3 = por %p52_p2, %p51_p1  ;;  %p37_p4 = scmp.ge.s32.totalorder %s1328_s8, 2 }
  0x12   : > { %p57_p5 = scmp.ne.s32.totalorder %s978_s24, %s974_s23  ;;  %p58_p6 = scmp.eq.s32.totalorder %s685_s30, 0 }
  0x13   : > { %s133_s12 = sadd.s32 1, %s970_s22  ;;  %s1330_s8 = smov (%p37_p4, %s1328_s8), 0 }
  0x14   : > { %1304 = sst [smem:[#allocation11_spill]] %s1330_s8  ;;  %p1120_p7 = por %p58_p6, %p57_p5 }
  0x15   : > { %p143_p8 = scmp.ne.s32.totalorder %s970_s22, %s966_s21  ;;  %s39_s14 = ssub.s32 %s998_s28, %s1330_s8 }
  0x16   : > { %p144_p9 = scmp.eq.s32.totalorder %s685_s30, 3  ;;  %s41_s15 = sor.u32 %s40_s10, %s39_s14 }
  0x17   : > { %p131_p10 = scmp.eq.s32.totalorder %s39_s14, 0  ;;  %p42_p11 = scmp.eq.s32.totalorder %s41_s15, 0 }
  0x18   : > { %p1128_p12 = por %p144_p9, %p143_p8  ;;  %p149_p13 = scmp.ne.s32.totalorder %s966_s21, %s962_s20 }
  0x19   : > { %s1133_s17 = scalar_select %p131_p10, %s970_s22, %s133_s12  }
  0x1a   : > { %s1306_s16 = scalar_select %p1128_p12, 1, 0 }
  0x1b   : > { %1307 = sst [smem:[#allocation12_spill]] %s1133_s17  ;;  %p150_p0 = scmp.eq.s32.totalorder %s686_s6, 3 }
  0x1c   : > { %s1136_s18 = scalar_select %p42_p11, %s982_s25, %s44_s9  }
  0x1d   : > { %p745_p1 = scmp.lt.s32.totalorder %s1002_s29, 4  ;;  %p1141_p2 = por %p150_p0, %p149_p13 }
  0x1e   : > { %s205_s23 = sand.u32 1, %s982_s25   ;;  %s690_s10 = sshll.u32 %s998_s28, 2 }
  0x1f   : > { %s1308_s19 = scalar_select %p1141_p2, 1, 0 }
  0x20   : > { %s689_s30 = sshll.u32 %s205_s23, 4  ;;  %s214_s14 = sadd.s32 %s994_s3, %s690_s10 }
  0x21   : > { %s209_s15 = scalar_lea.vmem [#allocation4], %s689_s30  ;;  %s691_s7 = sshll.u32 %s214_s14, 7 }
  0x22   : > { %s217_s8 = sshll.u32 %s209_s15, 4  ;;  %s1153_s9 = scalar_lea.hbm %s1293_s0, %s691_s7  ;;  %s1148_s8 = int_to_ptr.vmem [resolvable:$true] %s217_s8 }
  0x23   : > { %p1157_p4 = pnand %p745_p1, %p1112_p3  ;;  %s1161_s30 = scalar_lea.sflag [#allocation5], %s205_s23 }
  0x24   : > { %s850_s10 = scalar_lea.hbm %s1153_s9, 256  ;;  %s855_s17 = scalar_lea.hbm %s1293_s0, 1024 }
  0x25   : > { %p851_p5 = scmp.ne.s32.totalorder %s1153_s9, %s850_s10  ;;  %p852_p6 = pneg %p1157_p4 }
  0x26   : > { %p856_p3 = scmp.lt.u32.totalorder %s1153_s9, %s1293_s0  ;;  %p857_p10 = scmp.lt.u32.totalorder %s855_s17, %s850_s10 }
  0x27   : > { %p853_p8 = pnand %p852_p6, %p851_p5  ;;  %p859_p13 = scmp.lt.u32.totalorder %s850_s10, %s1153_s9 }
  0x28   : > { %p858_p11 = por %p857_p10, %p856_p3 }
  0x29   : > { %p854_p9 = pneg %p853_p8 }
  0x2a   : > { %p860_p0 = por %p859_p13, %p858_p11 }
  0x2c   : > { %p861_p1 = pnand %p860_p0, %p854_p9 }
  0x2e   : > { %864 = shalt.err (!%p861_p1)
}
  0x2f   : > { %s865_s23 = scalar_lea.vmem %s1148_s8, 256  ;;  %s1004_s12 = smov [#allocation4]  }
  0x30   : > { %p866_p5 = scmp.ne.s32.totalorder %s1148_s8, %s865_s23  ;;  %s870_s7 = sshll.u32 %s1004_s12, 4  ;;  %s871_s7 = int_to_ptr.vmem [resolvable:$false] %s870_s7 }
  0x31   : > { %s872_s11 = scalar_lea.vmem %s871_s7, 512  ;;  %p873_p12 = scmp.lt.s32.totalorder %s1148_s8, %s871_s7 }
  0x32   : > { %p868_p8 = pnand %p866_p5, %p852_p6  ;;  %p874_p3 = scmp.lt.s32.totalorder %s872_s11, %s865_s23 }
  0x34   : > { %p869_p2 = pneg %p868_p8  ;;  %p875_p10 = por %p874_p3, %p873_p12 }
  0x36   : > { %p876_p11 = pnand %p875_p10, %p869_p2 }
  0x38   : > { %879 = shalt.err (!%p876_p11)
}
  0x39   : > { %s1005_s10 = smov 256   ;;  %s1006_s17 = smov 128  }
  0x3a   : > { %s1007_s14 = smov 8   ;;  %p692_p6 = scmp.ge.s32.totalorder %s1002_s29, 1 }
  0x3b   : > { %740 = dma.hbm_to_vmem [thread:$0]  (!%p1157_p4), %s1153_s9, 256, %s1148_s8, %s1161_s30, %s1005_s10, %s1006_s17, %s1007_s14  }
  0x3c   : > { %p225_p9 = scmp.lt.s32.totalorder %s1002_s29, 5 }
  0x3e   : > { %p226_p13 = pnand %p692_p6, %p225_p9 }
  0x3f   : > { %s231_s15 = sand.u32 (!%p226_p13), 1, %s978_s24  }
  0x40   : > { %229 = sbr.rel (%p226_p13) target bundleno = 1146 (0x47a), region = 36  ;;  %s693_s23 = sshll.u32 (!%p226_p13), %s231_s15, 4 }
  0x41   : > { %s232_s12 = scalar_lea.sflag (!%p226_p13), [#allocation5], %s231_s15  ;;  %s235_s7 = scalar_lea.vmem (!%p226_p13), [#allocation4], %s693_s23 }
  0x47   : > { %953 = dma.done.wait (%p1120_p7), %s232_s12, 256  }
  0x48   : > { %955 = vsyncadd (%p1120_p7), %s232_s12, 4294967040  ;;  %s257_s8 = sand.u32 1, %s966_s21   ;;  %p266_p12 = scmp.lt.s32.totalorder %s990_s27, 1 }
  0x49   : > { %s1200_s9 = sshll.u32 %s257_s8, 3  ;;  %p696_p7 = scmp.ne.s32.totalorder %s986_s26, 0 }
  0x4a   : > { %s267_s6 = scalar_select %p266_p12, %s990_s27, 1 }
  0x4b   : > { %s259_s14 = scalar_lea.vmem [#allocation7], %s1200_s9  ;;  %273 = sbr.rel (%p696_p7) target bundleno = 82 (0x52), region = 44  ;;  %vm274_vm0 = vcmask (!%p696_p7), 130048   ;;  %v1008_v0 = vmov (!%p696_p7), 0.0  }
  0x4c   : > { %s695_s30 = sshll.u32 %s267_s6, 3  ;;  %275 = vst.msk [vmem:[#allocation2] sm:$0xff] (!%p696_p7), %vm274_vm0, %v1008_v0  ;;  %276 = vst.msk [vmem:[#allocation2 + $0x8] sm:$0xff] (!%p696_p7), %vm274_vm0, %v1008_v0 }
  0x4d   : > { %s1206_s17 = scalar_lea.vmem %s1298_s5, %s695_s30 }
  0x52 PF: > { %v277_v1 = vld [vmem:[%s235_s7] sm:$0xff]  ;;  %v278_v2 = vld [vmem:[%s235_s7 + $0x8] sm:$0xff]  ;;  %vm358_vm1 = vcmask 130048   ;;  %p697_p2 = scmp.ne.s32.totalorder %s986_s26, 1 }
  0x53   : > { %v729_v3 = vpack.c.bf16 %v278_v2, %v277_v1  ;;  %716 = vmatprep.mubr.f32.mxu0 %v277_v1  ;;  %v280_v4 = vld [vmem:[#allocation2 + $0x8] sm:$0xff]  ;;  %v279_v5 = vld [vmem:[#allocation2] sm:$0xff]  ;;  %s1009_s13 = smov (!%p697_p2), 120   ;;  %v367_v11 = vlaneseq (!%p697_p2)  ;;  %vm377_vm3 = vcmask (!%p697_p2), 64512   ;;  %s395_s26 = sld [smem:[#allocation3]] (!%p697_p2)  ;;  %v1010_v43 = vmov (!%p697_p2), 0.0  }
  0x54   : > { %v409_v41 = vld [vmem:[%s1294_s1] sm:$0xff] (!%p697_p2)  ;;  %724 = vmatprep.subr.mxu1 (!%p697_p2), %v1010_v43  ;;  %vm1011_vm4 = vmmov (!%p697_p2), 0   ;;  %vm555_vm5 = vcmask (!%p697_p2), 7168  }
  0x55   : > { %730 = vmatprep.subr.bf16.mxu0 %v729_v3  ;;  %v368_v12 = vshrl.u32 (!%p697_p2), %v367_v11, 7  ;;  %v370_v13 = vand.u32 (!%p697_p2), 127, %v367_v11  ;;  %v484_v42 = vld [vmem:[%s1295_s2] sm:$0xff] (!%p697_p2)  ;;  %726 = vmatprep.mubr.msk.f32.mxu1 (!%p697_p2), %vm1011_vm4, %v1010_v43 }
  0x56   : > { %732 = vmatpush3.bf16.xpose.msra.mxu0 %v729_v3  ;;  %725 = vmatpush3.msra.mxu1 (!%p697_p2), %v484_v42 }
  0x57   : > { %vm371_vm2 = vcmp.eq.s32.totalorder (!%p697_p2), %v368_v12, %v370_v13  ;;  %719 = vmatprep.subr.mxu0 (!%p697_p2), %v1010_v43 }
  0x59   : > { %v396_v32 = vstv (!%p697_p2), %s395_s26 }
  0x5d   : > { %717 = vmatmul.mubr.f32.vlgmr.msra.gmra.mrb[0].mxu0 %v278_v2 }
  0x5e   : > { %720 = vmatpush3.msra.mxu0 (!%p697_p2), %v409_v41  ;;  %721 = vmatprep.mubr.msk.f32.mxu0 (!%p697_p2), %vm1011_vm4, %v1010_v43 }
 0x12e   : > { %364 = sbr.rel (%p697_p2) target bundleno = 1121 (0x461), region = 48 }
 0x130   : > { %v718_v6 = vpop.f32.mrb[0].mxu0 }
 0x131   : > { %v357_v7 = vadd.f32 %v718_v6, %v280_v4  ;;  %v347_v8 = vpop.f32.mrb[1].mxu0 }
 0x132   : > { %v356_v9 = vadd.f32 %v347_v8, %v279_v5 }
 0x133   : > { %360 = vst.msk [vmem:[#allocation2 + $0x8] sm:$0xff] %vm358_vm1, %v357_v7 }
 0x134   : > { %359 = vst.msk [vmem:[#allocation2] sm:$0xff] %vm358_vm1, %v356_v9 }
 0x13a   : > { %v366_v10 = vld [vmem:[#allocation2 + $0x8] sm:$0xff] }
 0x13b   : > { %373 = vrot.lane.b32.xlu0 %v366_v10, %s1009_s13  ;;  %v365_v17 = vld [vmem:[#allocation2] sm:$0xff] }
 0x13c   : > { %v381_v18 = vsel %vm371_vm2, %v365_v17, 0.0 }
 0x13d   : > { %v382_v19 = vsel %vm377_vm3, %v381_v18, 0.0 }
 0x13e   : > { %v383_v20 = vrot.slane %v382_v19, 4 }
 0x140   : > { %v384_v21 = vadd.f32 %v383_v20, %v382_v19 }
 0x142   : > { %v385_v22 = vrot.slane %v384_v21, 2 }
 0x144   : > { %v386_v23 = vadd.f32 %v385_v22, %v384_v21 }
 0x146   : > { %v387_v24 = vrot.slane %v386_v23, 1 }
 0x148   : > { %v388_v25 = vadd.f32 %v387_v24, %v386_v23 }
 0x14a   : > { %v391_v26 = vmax.f32 %v388_v25, 1e-24 }
 0x14c   : > { %842 = vrsqrt.f32 %v391_v26 }
 0x156   : > { %v843_v29 = vpop.eup %842 }
 0x1ad   : > { %v374_v14 = vpop.permute.xlu0 %373 }
 0x1ae   : > { %v376_v15 = vsel %vm371_vm2, %v374_v14, 0.0 }
 0x1af   : > { %v378_v16 = vsel %vm377_vm3, %v376_v15, 0.0 }
 0x1b0   : > { %379 = vadd.xlane.f32.xlu0 %v378_v16 }
 0x23d   : > { %v380_v27 = vpop.xlane.xlu0 %379 }
 0x23e   : > { %v389_v28 = vmax.f32 %v380_v27, 1e-24 }
 0x240   : > { %844 = vrsqrt.f32 %v389_v28 }
 0x24a   : > { %v845_v30 = vpop.eup %844 }
 0x24b   : > { %v393_v31 = vmul.f32 %v845_v30, %v366_v10 }
 0x24d   : > { %v394_v33 = vmul.f32 %v843_v29, %v393_v31 }
 0x24f   : > { %v397_v34 = vmul.f32 %v396_v32, %v394_v33 }
 0x251   : > { %v398_v35 = vsel %vm377_vm3, %v397_v34, -inf }
 0x252   : > { %399 = vmax.xlane.f32.xlu1 %v398_v35 }
 0x2df   : > { %v400_v36 = vpop.xlane.xlu1 %399 }
 0x2e0   : > { %v401_v37 = vsub.f32 %v397_v34, %v400_v36 }
 0x2e2   : > { %v402_v38 = vmul.f32 1.442695, %v401_v37 }
 0x2e4   : > { %846 = vpow2.f32 %v402_v38 }
 0x2ee   : > { %v847_v39 = vpop.eup %846 }
 0x2ef   : > { %v404_v40 = vsel %vm377_vm3, %v847_v39, 0.0 }
 0x2f0   : > { %405 = vadd.xlane.f32.xlu1 %v404_v40 }
 0x37d   : > { %v406_v44 = vpop.xlane.xlu1 %405 }
 0x37e   : > { %848 = vrcp.f32 %v406_v44 }
 0x388   : > { %v849_v45 = vpop.eup %848 }
 0x389   : > { %v408_v46 = vmul.f32 %v849_v45, %v847_v39 }
 0x38b   : > { %722 = vmatmul.mubr.msk.f32.vlgmr.msra.gmra.mrb[0].mxu0 %vm377_vm3, %v408_v46  ;;  %727 = vmatmul.mubr.msk.f32.vlgmr.msra.gmra.mrb[0].mxu1 %vm377_vm3, %v408_v46 }
 0x45e   : > { %v479_v47 = vpop.f32.mrb[0].mxu0  ;;  %v551_v48 = vpop.f32.mrb[0].mxu1 }
 0x45f   : > { %483 = vst.msk [vmem:[%s259_s14] sm:$0xff] %vm358_vm1, %v479_v47  ;;  %v723_v49 = vpop.f32.mrb[1].mxu0  ;;  %v728_v50 = vpop.f32.mrb[1].mxu1 }
 0x460   : > { %556 = vst.msk [vmem:[%s1206_s17] sm:$0xff] %vm555_vm5, %v551_v48 }
 0x461 PF: > { %s701_s6 = sshll.u32 %s990_s27, 7  ;;  %s575_s13 = sshll.u32 %s259_s14, 4  ;;  %s576_s13 = int_to_ptr.vmem [resolvable:$true] %s575_s13 }
 0x462   : > { %s1233_s10 = scalar_lea.hbm %s1297_s4, %s701_s6  ;;  %s558_s26 = scalar_lea.sflag [#allocation6], %s257_s8 }
 0x463   : > { %s880_s15 = scalar_lea.vmem %s576_s13, 128  ;;  %p1310_p0 = scmp.ne.s32.totalorder %s1306_s16, 0 }
 0x464   : > { %p881_p4 = scmp.ne.s32.totalorder %s576_s13, %s880_s15  ;;  %s1012_s17 = smov [#allocation7]  }
 0x465   : > { %s884_s23 = sshll.u32 %s1012_s17, 4  ;;  %s885_s23 = int_to_ptr.vmem [resolvable:$false] %s884_s23 }
 0x466   : > { %p882_p1 = pnand %p881_p4, %p1310_p0  ;;  %s886_s12 = scalar_lea.vmem %s885_s23, 256 }
 0x467   : > { %p887_p8 = scmp.lt.s32.totalorder %s576_s13, %s885_s23  ;;  %p888_p3 = scmp.lt.s32.totalorder %s886_s12, %s880_s15 }
 0x468   : > { %p883_p5 = pneg %p882_p1 }
 0x469   : > { %p889_p10 = por %p888_p3, %p887_p8 }
 0x46b   : > { %p890_p11 = pnand %p889_p10, %p883_p5 }
 0x46d   : > { %893 = shalt.err (!%p890_p11)
}
 0x46e   : > { %s894_s27 = scalar_lea.hbm %s1233_s10, 128  ;;  %s898_s14 = scalar_lea.hbm %s1297_s4, 256 }
 0x46f   : > { %p895_p6 = scmp.ne.s32.totalorder %s1233_s10, %s894_s27  ;;  %p899_p12 = scmp.lt.u32.totalorder %s1233_s10, %s1297_s4 }
 0x470   : > { %p900_p7 = scmp.lt.u32.totalorder %s898_s14, %s894_s27  ;;  %p902_p4 = scmp.lt.u32.totalorder %s894_s27, %s1233_s10 }
 0x471   : > { %p896_p9 = pnand %p895_p6, %p1310_p0 }
 0x472   : > { %p901_p2 = por %p900_p7, %p899_p12 }
 0x473   : > { %p897_p13 = pneg %p896_p9 }
 0x474   : > { %p903_p1 = por %p902_p4, %p901_p2 }
 0x476   : > { %p904_p5 = pnand %p903_p1, %p897_p13 }
 0x478   : > { %907 = shalt.err (!%p904_p5)
}
 0x479   : > { %735 = dma.vmem_to_hbm [thread:$0]  (%p1310_p0), %s576_s13, 128, %s1233_s10, %s558_s26  }
 0x47a PF: > { %p746_p8 = scmp.ge.s32.totalorder %s1002_s29, 2  ;;  %s590_s30 = sand.u32 1, %s962_s20  }
 0x47b   : > { %p1311_p3 = scmp.ne.s32.totalorder %s1308_s19, 0  ;;  %s591_s11 = scalar_lea.sflag [#allocation6], %s590_s30 }
 0x47d   : > { %p742_p10 = pnand %p746_p8, %p1311_p3 }
 0x47f   : > { %957 = dma.done.wait (!%p742_p10), %s591_s11, 128  }
 0x480   : > { %959 = vsyncadd (!%p742_p10), %s591_s11, 4294967168  ;;  %s23_s29 = sadd.s32 1, %s1002_s29   ;;  %s1312_s15 = sld [smem:[#allocation12_spill]] }
 0x481   : > { %p20_p11 = scmp.ge.s32.totalorder %s23_s29, 6   ;;  %s1313_s16 = sld [smem:[#allocation10_spill]] }
 0x482   : > { %s1314_s10 = sld [smem:[#allocation11_spill]]  ;;  %s1315_s20 = smov %s966_s21 }
 0x483   : > { %s1316_s21 = smov %s970_s22  ;;  %s1318_s23 = smov %s978_s24 }
 0x484   : > { %s1319_s24 = smov %s982_s25  ;;  %s1320_s25 = smov %s1136_s18 }
 0x485   : > { %s1321_s26 = smov %s994_s3  ;;  %s1322_s27 = smov %s998_s28 }
 0x486   : > { %s1317_s22 = smov %s1312_s15  ;;  %22 = sbr.rel (!%p20_p11) target bundleno = 11 (0xb), region = 101 }
 0x487   : > { %s1323_s3 = smov %s1313_s16 }
 0x488   : > { %s1324_s28 = smov %s1314_s10 }
 0x48d   :  { %603 = vsyncpa [#allocation5], 1 }
 0x48e   :  { %605 = vsyncpa [#allocation5 + $0x1], 1 }
 0x48f   :  { %606 = vsyncpa [#allocation6], 1 }
 0x490   :  { %608 = vsyncpa [#allocation6 + $0x1], 1 }

</bundles_post_ra>
